<compile_context>
chip_gen: v7x
topology: tpu7x:2x2x1
jax: 0.10.0
libtpu: 0.0.40
codegen_flags: <defaults>
</compile_context>

<pallas_src>
import functools

import jax
import jax.numpy as jnp
import numpy as np
from jax import lax
from jax.experimental import pallas as pl
from jax.experimental.pallas import tpu as pltpu

KSIZE = 7
PAD = 3
LN_EPS = 1e-5


# ----------------------------------------------------------------------------
# One-time helpers
# ----------------------------------------------------------------------------
_ROLL_LIKE_JNP = None


def _roll_matches_jnp():
    """One-time probe of pltpu.roll's shift direction.

    Guards the conv-tap shifts against a convention flip between JAX versions;
    a single cached (8,128) launch.
    """
    global _ROLL_LIKE_JNP
    if _ROLL_LIKE_JNP is None:
        def probe(x_ref, o_ref):
            o_ref[...] = pltpu.roll(x_ref[...], 1, axis=1)

        x = jnp.arange(8 * 128, dtype=jnp.float32).reshape(8, 128)
        y = pl.pallas_call(
            probe, out_shape=jax.ShapeDtypeStruct((8, 128), jnp.float32))(x)
        if bool(jnp.array_equal(y, jnp.roll(x, 1, axis=1))):
            _ROLL_LIKE_JNP = True
        elif bool(jnp.array_equal(y, jnp.roll(x, -1, axis=1))):
            _ROLL_LIKE_JNP = False
        else:  # unexpected; assume documented jnp.roll semantics
            _ROLL_LIKE_JNP = True
    return _ROLL_LIKE_JNP


def _vmem_capacity_bytes():
    try:
        return int(pltpu.get_tpu_info().vmem_capacity_bytes)
    except Exception:
        return 64 * 1024 * 1024  # conservative: v7x per-TensorCore VMEM


# ----------------------------------------------------------------------------
# Kernel
# ----------------------------------------------------------------------------
def convnext_kernel(x_ref, rm_ref, cm_ref, dww_ref, dwb_ref, lng_ref, lnb_ref,
                    w1_ref, b1_ref, w2_ref, b2_ref, out_ref, *,
                    width, roll_like_jnp):
    # x_ref block:   (1, C, S)  channels-first, S = H*W lane-dense
    # out_ref block: (1, C, S)
    _, C, S = x_ref.shape

    xf = x_ref[0]                        # (C, S)
    rm = rm_ref[...]                     # (7, S)  row-halo masks (per dy)
    cm = cm_ref[...]                     # (7, S)  column-halo masks (per dx)
    dw = dww_ref[...]                    # (49, C, 1) per-tap depthwise weights

    def shift_src(v, s):
        # result[q] = v[(q + s) mod S] along the lane axis (one XLU rotate).
        r = (-s) % S if roll_like_jnp else s % S
        if r == 0:
            return v
        return pltpu.roll(v, r, axis=1)

    # ---- depthwise 7x7 conv as lane rolls + halo masks ----------------------
    # Column-shifted planes with the column mask pre-folded (7 rolls, 7 muls).
    # Row shifts below are whole multiples of W, so the pre-folded column mask
    # stays aligned with the destination column; wrapped out-of-image rows are
    # killed once per dy by the row mask.
    xc = [shift_src(xf, dx - PAD) * cm[dx:dx + 1, :] for dx in range(KSIZE)]

    acc = None
    for dy in range(KSIZE):
        rs = (dy - PAD) * width
        inner = None
        for dx in range(KSIZE):
            term = shift_src(xc[dx], rs) * dw[dy * KSIZE + dx]   # (C,S)*(C,1)
            inner = term if inner is None else inner + term
        contrib = rm[dy:dy + 1, :] * inner                       # mask per dy
        acc = contrib if acc is None else acc + contrib
    acc = acc + dwb_ref[...]                                     # (C,1) bias

    # ---- LayerNorm over channels (two-pass for numerics) ---------------------
    inv_c = 1.0 / C
    mean = jnp.sum(acc, axis=0, keepdims=True) * inv_c           # (1, S)
    cen = acc - mean
    var = jnp.sum(cen * cen, axis=0, keepdims=True) * inv_c
    xn = cen * lax.rsqrt(var + LN_EPS)
    xn = xn * lng_ref[...] + lnb_ref[...]                        # (C,1) affine

    # ---- pointwise MLP, channels-first: C -> 4C -> ReLU -> C -----------------
    h = jnp.dot(w1_ref[...], xn.astype(w1_ref.dtype),
                preferred_element_type=jnp.float32) + b1_ref[...]
    h = jnp.maximum(h, 0.0)
    o = jnp.dot(w2_ref[...], h.astype(w2_ref.dtype),
                preferred_element_type=jnp.float32) + b2_ref[...]

    out_ref[0] = o                                 # lane-dense store (S lanes)


# ----------------------------------------------------------------------------
# Wrapper
# ----------------------------------------------------------------------------
def convnext_block(x_nchw, params, *, mlp_dtype=None):
    """x_nchw: (B, C, H, W) float32. Returns (B, C, H, W) float32."""
    B, C, H, W = x_nchw.shape
    S = H * W
    dww, dwb, lng, lnb, w1, b1, w2, b2 = params

    if mlp_dtype is None:
        # bf16 feeds the MXU at full rate on v6e/v7x and halves weight traffic;
        # all elementwise math stays f32 (v5e has no bf16 VPU/EUP).
        mlp_dtype = jnp.bfloat16 if C >= 64 else jnp.float32

    # NCHW -> (B, C, S): contiguous reshape — no transpose, no pad.
    x = x_nchw.reshape(B, C, S).astype(jnp.float32)

    # Per-tap depthwise weights, (49, C, 1), tap index k = dy*7 + dx.
    dww_k = jnp.transpose(dww.reshape(C, KSIZE * KSIZE), (1, 0)).reshape(
        KSIZE * KSIZE, C, 1).astype(jnp.float32)
    dwb_k = dwb.reshape(C, 1).astype(jnp.float32)
    lng_k = lng.reshape(C, 1).astype(jnp.float32)
    lnb_k = lnb.reshape(C, 1).astype(jnp.float32)
    w1_k = w1.astype(mlp_dtype)                       # (4C, C)
    b1_k = b1.reshape(4 * C, 1).astype(jnp.float32)
    w2_k = w2.astype(mlp_dtype)                       # (C, 4C)
    b2_k = b2.reshape(C, 1).astype(jnp.float32)

    # Halo masks on the flattened spatial axis (row mask per dy, col mask per
    # dx).  Tiny (7, S) f32 constants shared by every grid step.
    pos = np.arange(S, dtype=np.int64)
    row = (pos // W)[None, :]
    col = (pos % W)[None, :]
    d = np.arange(KSIZE, dtype=np.int64)[:, None] - PAD
    rowmask = jnp.asarray(((row + d >= 0) & (row + d < H)).astype(np.float32))
    colmask = jnp.asarray(((col + d >= 0) & (col + d < W)).astype(np.float32))

    params_all = (rowmask, colmask, dww_k, dwb_k, lng_k, lnb_k,
                  w1_k, b1_k, w2_k, b2_k)

    # Generation-aware VMEM budget: measured footprint (double-buffered blocks
    # and params + in-kernel temporaries), floored at the default scoped size
    # and capped at 75% of the chip's physical VMEM.
    def nbytes(a):
        return int(np.prod(a.shape)) * jnp.dtype(a.dtype).itemsize

    block_bytes = 2 * C * S * 4                            # in + out blocks
    param_bytes = sum(nbytes(a) for a in params_all)
    temp_bytes = (11 * C * S + 4 * C * S) * 4              # xc/acc/xn + 4C MLP
    need = 2 * (block_bytes + param_bytes) + temp_bytes + (4 << 20)
    cap = (3 * _vmem_capacity_bytes()) // 4
    vmem_limit = int(min(max(need, 32 << 20), cap))

    kernel = functools.partial(convnext_kernel, width=W,
                               roll_like_jnp=_roll_matches_jnp())

    def full_spec(a):
        zeros = (0,) * a.ndim
        return pl.BlockSpec(a.shape, lambda b, _z=zeros: _z)

    out = pl.pallas_call(
        kernel,
        out_shape=jax.ShapeDtypeStruct((B, C, S), jnp.float32),
        grid=(B,),
        in_specs=[pl.BlockSpec((1, C, S), lambda b: (b, 0, 0))]
                 + [full_spec(a) for a in params_all],
        out_specs=pl.BlockSpec((1, C, S), lambda b: (b, 0, 0)),
        compiler_params=pltpu.CompilerParams(
            dimension_semantics=("parallel",),
            vmem_limit_bytes=vmem_limit),
    )(x, *params_all)

    # Contiguous (free) reshape back to NCHW — no transpose needed.
    return out.reshape(B, C, H, W)


# ----------------------------------------------------------------------------
# Reference + test
# ----------------------------------------------------------------------------
def convnext_reference(x_nchw, params):
    """Pure-JAX reference that mirrors the PyTorch forward exactly."""
    dww, dwb, lng, lnb, w1, b1, w2, b2 = params
    B, C, H, W = x_nchw.shape
    y = lax.conv_general_dilated(
        x_nchw, dww, window_strides=(1, 1), padding="SAME",
        dimension_numbers=("NCHW", "OIHW", "NCHW"),
        feature_group_count=C)
    y = y + dwb.reshape(1, C, 1, 1)
    y = jnp.transpose(y, (0, 2, 3, 1))  # NHWC
    mean = jnp.mean(y, axis=-1, keepdims=True)
    var = jnp.mean((y - mean) ** 2, axis=-1, keepdims=True)
    y = (y - mean) / jnp.sqrt(var + LN_EPS)
    y = y * lng + lnb
    y = y @ w1.T + b1
    y = jnp.maximum(y, 0.0)
    y = y @ w2.T + b2
    return jnp.transpose(y, (0, 3, 1, 2))


def init_params(key, channels):
    """Deterministic synthetic parameters matching the PyTorch shapes."""
    ks = jax.random.split(key, 8)
    C = channels
    dww = jax.random.normal(ks[0], (C, 1, KSIZE, KSIZE), jnp.float32) * 0.1
    dwb = jax.random.normal(ks[1], (C,), jnp.float32) * 0.1
    lng = 1.0 + 0.1 * jax.random.normal(ks[2], (C,), jnp.float32)
    lnb = 0.1 * jax.random.normal(ks[3], (C,), jnp.float32)
    w1 = jax.random.normal(ks[4], (4 * C, C), jnp.float32) * 0.1
    b1 = jax.random.normal(ks[5], (4 * C,), jnp.float32) * 0.1
    w2 = jax.random.normal(ks[6], (C, 4 * C), jnp.float32) * 0.1
    b2 = jax.random.normal(ks[7], (C,), jnp.float32) * 0.1
    return (dww, dwb, lng, lnb, w1, b1, w2, b2)


if __name__ == "__main__":
    key = jax.random.PRNGKey(0)
    kx, kp, kx2, kp2 = jax.random.split(key, 4)

    # f32 path (tight tolerance), toy spec shape.
    B, C, H, W = 2, 4, 16, 16
    x = jax.random.normal(kx, (B, C, H, W), jnp.float32)
    params = init_params(kp, C)
    out = jax.block_until_ready(convnext_block(x, params))
    ref = jax.block_until_ready(convnext_reference(x, params))
    np.testing.assert_allclose(np.asarray(out), np.asarray(ref),
                               rtol=2e-4, atol=2e-4)

    # bf16-MLP path (C >= 64 auto-enables bf16 matmul inputs); loose tolerance
    # smoke test so the production dtype path is actually exercised.
    B2, C2, H2, W2 = 1, 64, 16, 16
    x2 = jax.random.normal(kx2, (B2, C2, H2, W2), jnp.float32)
    params2 = init_params(kp2, C2)
    out2 = jax.block_until_ready(convnext_block(x2, params2))
    ref2 = jax.block_until_ready(convnext_reference(x2, params2))
    np.testing.assert_allclose(np.asarray(out2), np.asarray(ref2),
                               rtol=5e-2, atol=8e-2)

    print("KERNEL_OK")
</pallas_src>

<mosaic_0001>
module attributes {stable_mosaic.version = 11 : i64} {
  func.func @probe(%arg0: memref<8x128xf32, #tpu.memory_space<vmem>>, %arg1: memref<8x128xf32, #tpu.memory_space<vmem>>) attributes {dimension_semantics = [], scalar_prefetch = 0 : i64, scratch_operands = 0 : i64, tpu.core_type = #tpu.core_type<tc>} {
    %c0 = arith.constant 0 : index
    %c0_0 = arith.constant 0 : index
    %0 = vector.load %arg0[%c0, %c0_0] : memref<8x128xf32, #tpu.memory_space<vmem>>, vector<8x128xf32>
    %c1_i32 = arith.constant 1 : i32
    %1 = tpu.dynamic_rotate %0 by %c1_i32 dim 1 : vector<8x128xf32>, i32 -> vector<8x128xf32>
    %c0_1 = arith.constant 0 : index
    %c0_2 = arith.constant 0 : index
    %2 = vector.load %arg1[%c0_1, %c0_2] : memref<8x128xf32, #tpu.memory_space<vmem>>, vector<8x128xf32>
    tpu.vector_store %arg1[%c0_1, %c0_2], %1 {strides = array<i32>} : memref<8x128xf32, #tpu.memory_space<vmem>>, vector<8x128xf32>,
    return
  }
}

</mosaic_0001>

<bundles_post_ra>
// kernel: tpu_custom_call.1
= control target key start
LH: loop header
LB: loop body
LE: loop exit
PB: predicated region body
PF: predicated region fallthrough
CT: control target
= control target key end

     0   :  { %6 = vsyncpa [#allocation3], 0  ;;  %s128_s0 = inlined_call_operand.hbm [shape: f32[8,128], index: 0, kind: input, shape index: {}]   ;;  %s129_s1 = inlined_call_operand.hbm [shape: f32[8,128], index: 1, kind: output, shape index: {}]  }
   0x1   :  { %7 = vsyncpa [#allocation4], 0  ;;  %s91_s6 = smov [#allocation2]   ;;  %s43_s10 = scalar_lea.hbm %s128_s0, 128 }
   0x2   :  { %s14_s7 = sshll.u32 %s91_s6, 4  ;;  %p44_p0 = scmp.ne.s32.totalorder %s128_s0, %s43_s10  ;;  %s15_s7 = int_to_ptr.vmem [resolvable:$true] %s14_s7 }
   0x3   :  { %p47_p1 = scmp.lt.u32.totalorder %s43_s10, %s128_s0 }
   0x5   :  { %p49_p2 = pnand %p47_p1, %p44_p0 }
   0x7   :  { %52 = shalt.err (!%p49_p2)
}
   0x8   :  { %s53_s15 = scalar_lea.vmem %s15_s7, 128  ;;  %p58_p4 = scmp.lt.s32.totalorder %s15_s7, %s15_s7 }
   0x9   :  { %p54_p3 = scmp.ne.s32.totalorder %s15_s7, %s53_s15  ;;  %p59_p5 = scmp.lt.s32.totalorder %s53_s15, %s53_s15 }
   0xb   :  { %p60_p6 = por %p59_p5, %p58_p4 }
   0xd   :  { %p61_p7 = pnand %p60_p6, %p54_p3 }
   0xf   :  { %64 = shalt.err (!%p61_p7)
}
  0x10   :  { %17 = dma.hbm_to_vmem [thread:$0]  %s128_s0, 128, %s15_s7, [#allocation3]  }
  0x11   :  { %87 = dma.done.wait [#allocation3], 128  }
  0x12   :  { %88 = vsyncadd [#allocation3], 4294967168  ;;  %v21_v0 = vld [vmem:[#allocation2] sm:$0xff]  ;;  %s92_s18 = smov 1   ;;  %s93_s19 = smov [#allocation5]  }
  0x13   :  { %22 = vrot.lane.b32.xlu0 %v21_v0, %s92_s18  ;;  %s31_s20 = sshll.u32 %s93_s19, 4  ;;  %s32_s20 = int_to_ptr.vmem [resolvable:$true] %s31_s20 }
  0x14   :  { %s65_s21 = scalar_lea.vmem %s32_s20, 128  ;;  %p70_p9 = scmp.lt.s32.totalorder %s32_s20, %s32_s20 }
  0x15   :  { %p66_p8 = scmp.ne.s32.totalorder %s32_s20, %s65_s21  ;;  %p71_p10 = scmp.lt.s32.totalorder %s65_s21, %s65_s21 }
  0x17   :  { %p72_p11 = por %p71_p10, %p70_p9 }
  0x19   :  { %p73_p12 = pnand %p72_p11, %p66_p8 }
  0x85   :  { %v23_v1 = vpop.permute.xlu0 %22 }
  0x86   :  { %24 = vst [vmem:[#allocation5] sm:$0xff] %v23_v1 }
  0x87   :  { %76 = shalt.err (!%p73_p12)
}
  0x88   :  { %s77_s0 = scalar_lea.hbm %s129_s1, 128 }
  0x89   :  { %p78_p13 = scmp.ne.s32.totalorder %s129_s1, %s77_s0  ;;  %p81_p0 = scmp.lt.u32.totalorder %s77_s0, %s129_s1 }
  0x8b   :  { %p83_p1 = pnand %p81_p0, %p78_p13 }
  0x8d   :  { %86 = shalt.err (!%p83_p1)
}
  0x8e   :  { %34 = dma.vmem_to_hbm [thread:$0]  %s32_s20, 128, %s129_s1, [#allocation4]  }
  0x8f   :  { %89 = dma.done.wait [#allocation4], 128  }
  0x90   :  { %90 = vsyncadd [#allocation4], 4294967168 }
  0x91   :  { %38 = vsyncpa [#allocation3], 1 }
  0x92   :  { %39 = vsyncpa [#allocation4], 1 }

</bundles_post_ra>
